<compile_context>
chip_gen: v5e
topology: v5e:2x2
jax: 0.10.0
libtpu: 0.0.40
codegen_flags: <defaults>
</compile_context>

<pallas_src>
import math
from functools import partial

import jax
import jax.numpy as jnp
import numpy as np
from jax.experimental import pallas as pl
from jax.experimental.pallas import tpu as pltpu


def _proj_corr_kernel(x1_ref, x2_ref, wq_ref, wvk_ref, bq_ref, bvk_ref,
                      tile_ref, mask_ref, ssel_ref, v_ref, mv_ref):
    """Per-batch: fused projections + mean (over features) of circular x-corr.

    x1_ref, x2_ref : (1, L, E)
    wq_ref         : (E, 2E)  [0 | Wq^T]   (zero-padded so Q lives in the K half)
    wvk_ref        : (E, 2E)  [Wv^T | Wk^T]
    bq_ref, bvk_ref: (1, 2E)
    tile_ref       : (L, L*L)   TileMat[m, t*L+s] = [m == s]
    mask_ref       : (L, L*L)   Mask[l, t*L+s]    = [s == (l - t) mod L]
    ssel_ref       : (L*L, L)   Ssel[t*L+s, t']   = [t == t']
    v_ref          : (1, L, E)   value projection output
    mv_ref         : (1, 1, L)   mean_value[b, tau] = mean_e corr[b, e, tau]
    """
    x1 = x1_ref[0]                          # (L, E)
    x2 = x2_ref[0]                          # (L, E)
    E = x1.shape[1]

    # Fused projections on the MXU:  qp = [0 | Q],  vk = [V | K].
    qp = jnp.dot(x1, wq_ref[...], preferred_element_type=jnp.float32) + bq_ref[...]
    vk = jnp.dot(x2, wvk_ref[...], preferred_element_type=jnp.float32) + bvk_ref[...]
    v_ref[0] = vk[:, :E].astype(v_ref.dtype)          # V is the offset-0 half

    # G[l, s] = <Q[l], K[s]>  (the zero half of qp annihilates the V half of vk)
    G = jax.lax.dot_general(qp, vk, (((1,), (1,)), ((), ())),
                            preferred_element_type=jnp.float32)          # (L, L)

    # Circular-diagonal sums via mask + two small MXU matmuls:
    #   Gshift[l, tau] = G[l, (l - tau) mod L]
    gt = jnp.dot(G, tile_ref[...], preferred_element_type=jnp.float32)   # (L, L*L)
    gshift = jnp.dot(gt * mask_ref[...], ssel_ref[...],
                     preferred_element_type=jnp.float32)                 # (L, L)
    mv_ref[0] = (jnp.sum(gshift, axis=0, keepdims=True) * (1.0 / E)
                 ).astype(mv_ref.dtype)


def _assemble_kernel(p_ref, w_ref, v_ref, out_ref):
    """Per-batch: all L rolled/scaled value terms, written lane-dense.

    p_ref  : (L*L, L)    stacked roll permutations; row i*L+l is one-hot at
                         (l + index[i]) % L, so (P @ V)[i*L:(i+1)*L] = roll(V, -index[i])
    w_ref  : (1, L*L, 1) softmax weight per row: w[i*L + l] = tmp_corr[b, i]
    v_ref  : (1, L, E)
    out_ref: (1, L, L*E) lane-dense output slab
    """
    L = v_ref.shape[1]
    E = v_ref.shape[2]
    rolled = jnp.dot(p_ref[...], v_ref[0], preferred_element_type=jnp.float32)  # (L*L, E)
    scaled = rolled * w_ref[0]                                                  # (L*L, E)
    for i in range(L):   # static unroll: per-term store into the concat layout
        out_ref[0, :, i * E:(i + 1) * E] = scaled[i * L:(i + 1) * L, :].astype(out_ref.dtype)


@partial(jax.jit, static_argnames=("K",))
def tdcm_forward(series, text_series, params, K):
    B, L, E = series.shape
    Bt, S, Et = text_series.shape
    assert S == L and Et == E and L % 2 == 0, "module requires S == L and even L"
    scale = 1.0 / math.sqrt(E)

    # Fused / padded projection weights:  qp = x1 @ [0 | Wq^T],  vk = x2 @ [Wv^T | Wk^T]
    zeros_w = jnp.zeros((E, E), jnp.float32)
    zeros_b = jnp.zeros((E,), jnp.float32)
    wq_pad = jnp.concatenate([zeros_w, params["wq"].T], axis=1)                # (E, 2E)
    bq_pad = jnp.concatenate([zeros_b, params["bq"]]).reshape(1, 2 * E)
    wvk = jnp.concatenate([params["wv"].T, params["wk"].T], axis=1)            # (E, 2E)
    bvk = jnp.concatenate([params["bv"], params["bk"]]).reshape(1, 2 * E)

    # Constant 0/1 operators for the in-kernel circular-diagonal extraction.
    ar = np.arange(L)
    lg, tg, sg = np.meshgrid(ar, ar, ar, indexing="ij")
    mask2d = (sg == (lg - tg) % L).astype(np.float32).reshape(L, L * L)
    tile_mat = np.tile(np.eye(L, dtype=np.float32), (1, L))                    # (L, L*L)
    ssel = np.kron(np.eye(L, dtype=np.float32), np.ones((L, 1), np.float32))   # (L*L, L)

    # ---- kernel 1: fused projections + circular cross-correlation mean ------
    values, mean_value = pl.pallas_call(
        _proj_corr_kernel,
        out_shape=(jax.ShapeDtypeStruct((B, L, E), jnp.float32),
                   jax.ShapeDtypeStruct((B, 1, L), jnp.float32)),
        grid_spec=pltpu.PrefetchScalarGridSpec(
            num_scalar_prefetch=0,
            grid=(B,),
            in_specs=[
                pl.BlockSpec((1, L, E), lambda b: (b, 0, 0)),
                pl.BlockSpec((1, L, E), lambda b: (b, 0, 0)),
                pl.BlockSpec((E, 2 * E), lambda b: (0, 0)),
                pl.BlockSpec((E, 2 * E), lambda b: (0, 0)),
                pl.BlockSpec((1, 2 * E), lambda b: (0, 0)),
                pl.BlockSpec((1, 2 * E), lambda b: (0, 0)),
                pl.BlockSpec((L, L * L), lambda b: (0, 0)),
                pl.BlockSpec((L, L * L), lambda b: (0, 0)),
                pl.BlockSpec((L * L, L), lambda b: (0, 0)),
            ],
            out_specs=(
                pl.BlockSpec((1, L, E), lambda b: (b, 0, 0)),
                pl.BlockSpec((1, 1, L), lambda b: (b, 0, 0)),
            )),
        compiler_params=pltpu.CompilerParams(dimension_semantics=("parallel",)),
    )(series, text_series, wq_pad, wvk, bq_pad, bvk,
      jnp.asarray(tile_mat), jnp.asarray(mask2d), jnp.asarray(ssel))

    mean_value = mean_value.reshape(B, L)                                      # (B, L)

    # ---- glue: full descending sort (topk == L) + softmax weights (tiny) ----
    # TODO(synk): top_k / sort across the batch has no clean Pallas equivalent;
    # kept in JAX glue between the two pallas_calls.
    index = jax.lax.top_k(jnp.mean(mean_value, axis=0), L)[1]                  # (L,)
    weights = mean_value[:, index]                                             # (B, L)
    tmp_corr = jax.nn.softmax(weights * scale, axis=-1)                        # (B, L)

    # Stacked roll permutations: P[i*L + l, s] = [s == (l + index[i]) % L]
    l_ar = jnp.arange(L, dtype=jnp.int32)
    target = (l_ar[None, :] + index[:, None]) % L                              # (L, L)
    p_stack = (target[:, :, None] == l_ar[None, None, :]
               ).astype(jnp.float32).reshape(L * L, L)
    # Per-row weights: w_col[b, i*L + l, 0] = tmp_corr[b, i]
    w_col = jnp.repeat(tmp_corr, L, axis=1).reshape(B, L * L, 1)

    # ---- kernel 2: rolled & scaled value terms, lane-dense (B, L, L*E) ------
    cc = pl.pallas_call(
        _assemble_kernel,
        out_shape=jax.ShapeDtypeStruct((B, L, L * E), jnp.float32),
        grid_spec=pltpu.PrefetchScalarGridSpec(
            num_scalar_prefetch=0,
            grid=(B,),
            in_specs=[
                pl.BlockSpec((L * L, L), lambda b: (0, 0)),
                pl.BlockSpec((1, L * L, 1), lambda b: (b, 0, 0)),
                pl.BlockSpec((1, L, E), lambda b: (b, 0, 0)),
            ],
            out_specs=pl.BlockSpec((1, L, L * E), lambda b: (b, 0, 0))),
        compiler_params=pltpu.CompilerParams(dimension_semantics=("parallel",)),
    )(p_stack, w_col, values)

    return cc[..., :K], cc[..., -K:]


def tdcm_reference(series, text_series, params, K):
    """Pure-JAX mirror of the PyTorch forward (FFT path), for validation."""
    B, L, E = series.shape
    scale = 1.0 / math.sqrt(E)
    with jax.default_matmul_precision("float32"):
        q = series @ params["wq"].T + params["bq"]
        k = text_series @ params["wk"].T + params["bk"]
        v = text_series @ params["wv"].T + params["bv"]
    qf = jnp.fft.rfft(jnp.transpose(q, (0, 2, 1)), axis=-1)
    kf = jnp.fft.rfft(jnp.transpose(k, (0, 2, 1)), axis=-1)
    corr = jnp.fft.irfft(qf * jnp.conj(kf), axis=-1)                # (B, E, L)
    mean_value = jnp.mean(corr, axis=1)                             # (B, L)
    index = jax.lax.top_k(jnp.mean(mean_value, axis=0), L)[1]
    weights = mean_value[:, index]
    tmp = jax.nn.softmax(weights * scale, axis=-1)                  # (B, L)
    terms = []
    for i in range(L):
        rolled = jnp.roll(v, -int(index[i]), axis=1)
        terms.append(rolled * tmp[:, i][:, None, None])
    cc = jnp.concatenate(terms, axis=-1)
    return cc[..., :K], cc[..., -K:]


if __name__ == "__main__":
    d_model, seq_len, topk, batch = 32, 8, 4, 2

    key = jax.random.PRNGKey(0)
    keys = jax.random.split(key, 8)
    bound = 1.0 / math.sqrt(d_model)
    params = {
        "wq": jax.random.uniform(keys[0], (d_model, d_model), jnp.float32, -bound, bound),
        "wk": jax.random.uniform(keys[1], (d_model, d_model), jnp.float32, -bound, bound),
        "wv": jax.random.uniform(keys[2], (d_model, d_model), jnp.float32, -bound, bound),
        "bq": jax.random.uniform(keys[3], (d_model,), jnp.float32, -bound, bound),
        "bk": jax.random.uniform(keys[4], (d_model,), jnp.float32, -bound, bound),
        "bv": jax.random.uniform(keys[5], (d_model,), jnp.float32, -bound, bound),
    }
    series = jax.random.normal(keys[6], (batch, seq_len, d_model), jnp.float32)
    text_series = jax.random.normal(keys[7], (batch, seq_len, d_model), jnp.float32)

    out1, out2 = tdcm_forward(series, text_series, params, topk)
    jax.block_until_ready((out1, out2))

    ref1, ref2 = tdcm_reference(series, text_series, params, topk)
    assert out1.shape == (batch, seq_len, topk)
    assert out2.shape == (batch, seq_len, topk)
    np.testing.assert_allclose(np.asarray(out1), np.asarray(ref1), rtol=2e-3, atol=2e-3)
    np.testing.assert_allclose(np.asarray(out2), np.asarray(ref2), rtol=2e-3, atol=2e-3)

    print("KERNEL_OK")
</pallas_src>

<mosaic_0001>
module attributes {stable_mosaic.version = 11 : i64} {
  func.func @_proj_corr_kernel(%arg0: i32, %arg1: memref<1x8x32xf32, #tpu.memory_space<vmem>>, %arg2: memref<1x8x32xf32, #tpu.memory_space<vmem>>, %arg3: memref<32x64xf32, #tpu.memory_space<vmem>>, %arg4: memref<32x64xf32, #tpu.memory_space<vmem>>, %arg5: memref<1x64xf32, #tpu.memory_space<vmem>>, %arg6: memref<1x64xf32, #tpu.memory_space<vmem>>, %arg7: memref<8x64xf32, #tpu.memory_space<vmem>>, %arg8: memref<8x64xf32, #tpu.memory_space<vmem>>, %arg9: memref<64x8xf32, #tpu.memory_space<vmem>>, %arg10: memref<1x8x32xf32, #tpu.memory_space<vmem>>, %arg11: memref<1x1x8xf32, #tpu.memory_space<vmem>>) attributes {dimension_semantics = [#tpu.dimension_semantics<parallel>], iteration_bounds = array<i64: 2>, scalar_prefetch = 0 : i64, scratch_operands = 0 : i64, tpu.core_type = #tpu.core_type<tc>, window_params = [{transform_indices = @transform_0, window_bounds = array<i64: 1, 8, 32>}, {transform_indices = @transform_1, window_bounds = array<i64: 1, 8, 32>}, {pipeline_mode = #tpu.pipeline_mode<synchronous>, transform_indices = @transform_2, window_bounds = array<i64: 32, 64>}, {pipeline_mode = #tpu.pipeline_mode<synchronous>, transform_indices = @transform_3, window_bounds = array<i64: 32, 64>}, {pipeline_mode = #tpu.pipeline_mode<synchronous>, transform_indices = @transform_4, window_bounds = array<i64: 1, 64>}, {pipeline_mode = #tpu.pipeline_mode<synchronous>, transform_indices = @transform_5, window_bounds = array<i64: 1, 64>}, {pipeline_mode = #tpu.pipeline_mode<synchronous>, transform_indices = @transform_6, window_bounds = array<i64: 8, 64>}, {pipeline_mode = #tpu.pipeline_mode<synchronous>, transform_indices = @transform_7, window_bounds = array<i64: 8, 64>}, {pipeline_mode = #tpu.pipeline_mode<synchronous>, transform_indices = @transform_8, window_bounds = array<i64: 64, 8>}, {transform_indices = @transform_9, window_bounds = array<i64: 1, 8, 32>}, {transform_indices = @transform_10, window_bounds = array<i64: 1, 1, 8>}]} {
    %c0 = arith.constant 0 : index
    %c0_0 = arith.constant 0 : index
    %c0_1 = arith.constant 0 : index
    %0 = vector.load %arg1[%c0, %c0_0, %c0_1] : memref<1x8x32xf32, #tpu.memory_space<vmem>>, vector<1x8x32xf32>
    %1 = vector.shape_cast %0 : vector<1x8x32xf32> to vector<8x32xf32>
    %c0_2 = arith.constant 0 : index
    %c0_3 = arith.constant 0 : index
    %c0_4 = arith.constant 0 : index
    %2 = vector.load %arg2[%c0_2, %c0_3, %c0_4] : memref<1x8x32xf32, #tpu.memory_space<vmem>>, vector<1x8x32xf32>
    %3 = vector.shape_cast %2 : vector<1x8x32xf32> to vector<8x32xf32>
    %c0_5 = arith.constant 0 : index
    %c0_6 = arith.constant 0 : index
    %4 = vector.load %arg3[%c0_5, %c0_6] : memref<32x64xf32, #tpu.memory_space<vmem>>, vector<32x64xf32>
    %cst = arith.constant dense<0.000000e+00> : vector<8x64xf32>
    %5 = tpu.matmul %1, %4, %cst {dimension_numbers = #tpu.dot_dimension_numbers<[1], [0], [0], [1], [0, 0, 1, 1], [], []>} : vector<8x32xf32>, vector<32x64xf32>, vector<8x64xf32> -> vector<8x64xf32>
    %c0_7 = arith.constant 0 : index
    %c0_8 = arith.constant 0 : index
    %6 = vector.load %arg5[%c0_7, %c0_8] : memref<1x64xf32, #tpu.memory_space<vmem>>, vector<1x64xf32>
    %7 = vector.broadcast %6 : vector<1x64xf32> to vector<8x64xf32>
    %8 = arith.addf %5, %7 : vector<8x64xf32>
    %c0_9 = arith.constant 0 : index
    %c0_10 = arith.constant 0 : index
    %9 = vector.load %arg4[%c0_9, %c0_10] : memref<32x64xf32, #tpu.memory_space<vmem>>, vector<32x64xf32>
    %cst_11 = arith.constant dense<0.000000e+00> : vector<8x64xf32>
    %10 = tpu.matmul %3, %9, %cst_11 {dimension_numbers = #tpu.dot_dimension_numbers<[1], [0], [0], [1], [0, 0, 1, 1], [], []>} : vector<8x32xf32>, vector<32x64xf32>, vector<8x64xf32> -> vector<8x64xf32>
    %c0_12 = arith.constant 0 : index
    %c0_13 = arith.constant 0 : index
    %11 = vector.load %arg6[%c0_12, %c0_13] : memref<1x64xf32, #tpu.memory_space<vmem>>, vector<1x64xf32>
    %12 = vector.broadcast %11 : vector<1x64xf32> to vector<8x64xf32>
    %13 = arith.addf %10, %12 : vector<8x64xf32>
    %14 = vector.extract_strided_slice %13 {offsets = [0, 0], sizes = [8, 32], strides = [1, 1]} : vector<8x64xf32> to vector<8x32xf32>
    %c0_14 = arith.constant 0 : index
    %c0_15 = arith.constant 0 : index
    %c0_16 = arith.constant 0 : index
    %15 = vector.load %arg10[%c0_14, %c0_15, %c0_16] : memref<1x8x32xf32, #tpu.memory_space<vmem>>, vector<1x8x32xf32>
    %16 = vector.shape_cast %15 : vector<1x8x32xf32> to vector<8x32xf32>
    %17 = vector.shape_cast %14 : vector<8x32xf32> to vector<1x8x32xf32>
    tpu.vector_store %arg10[%c0_14, %c0_15, %c0_16], %17 {strides = array<i32>} : memref<1x8x32xf32, #tpu.memory_space<vmem>>, vector<1x8x32xf32>,
    %cst_17 = arith.constant dense<0.000000e+00> : vector<8x8xf32>
    %18 = tpu.matmul %8, %13, %cst_17 {dimension_numbers = #tpu.dot_dimension_numbers<[1], [1], [0], [0], [0, 0, 1, 0], [], []>} : vector<8x64xf32>, vector<8x64xf32>, vector<8x8xf32> -> vector<8x8xf32>
    %c0_18 = arith.constant 0 : index
    %c0_19 = arith.constant 0 : index
    %19 = vector.load %arg7[%c0_18, %c0_19] : memref<8x64xf32, #tpu.memory_space<vmem>>, vector<8x64xf32>
    %cst_20 = arith.constant dense<0.000000e+00> : vector<8x64xf32>
    %20 = tpu.matmul %18, %19, %cst_20 {dimension_numbers = #tpu.dot_dimension_numbers<[1], [0], [0], [1], [0, 0, 1, 1], [], []>} : vector<8x8xf32>, vector<8x64xf32>, vector<8x64xf32> -> vector<8x64xf32>
    %c0_21 = arith.constant 0 : index
    %c0_22 = arith.constant 0 : index
    %21 = vector.load %arg8[%c0_21, %c0_22] : memref<8x64xf32, #tpu.memory_space<vmem>>, vector<8x64xf32>
    %22 = arith.mulf %20, %21 : vector<8x64xf32>
    %c0_23 = arith.constant 0 : index
    %c0_24 = arith.constant 0 : index
    %23 = vector.load %arg9[%c0_23, %c0_24] : memref<64x8xf32, #tpu.memory_space<vmem>>, vector<64x8xf32>
    %cst_25 = arith.constant dense<0.000000e+00> : vector<8x8xf32>
    %24 = tpu.matmul %22, %23, %cst_25 {dimension_numbers = #tpu.dot_dimension_numbers<[1], [0], [0], [1], [0, 0, 1, 1], [], []>} : vector<8x64xf32>, vector<64x8xf32>, vector<8x8xf32> -> vector<8x8xf32>
    %cst_26 = arith.constant dense<0.000000e+00> : vector<8xf32>
    %25 = vector.multi_reduction <add>, %24, %cst_26 [0] : vector<8x8xf32> to vector<8xf32>
    %26 = vector.shape_cast %25 : vector<8xf32> to vector<1x8xf32>
    %cst_27 = arith.constant 3.125000e-02 : f32
    %27 = vector.broadcast %cst_27 : f32 to vector<1x8xf32>
    %28 = arith.mulf %26, %27 : vector<1x8xf32>
    %c0_28 = arith.constant 0 : index
    %c0_29 = arith.constant 0 : index
    %c0_30 = arith.constant 0 : index
    %29 = vector.load %arg11[%c0_28, %c0_29, %c0_30] : memref<1x1x8xf32, #tpu.memory_space<vmem>>, vector<1x1x8xf32>
    %30 = vector.shape_cast %29 : vector<1x1x8xf32> to vector<1x8xf32>
    %31 = vector.shape_cast %28 : vector<1x8xf32> to vector<1x1x8xf32>
    tpu.vector_store %arg11[%c0_28, %c0_29, %c0_30], %31 {strides = array<i32>} : memref<1x1x8xf32, #tpu.memory_space<vmem>>, vector<1x1x8xf32>,
    return
  }
  func.func @transform_0(%arg0: i32) -> (i32, i32, i32) {
    %c0_i32 = arith.constant 0 : i32
    %c0_i32_0 = arith.constant 0 : i32
    %c0_i32_1 = arith.constant 0 : i32
    return %arg0, %c0_i32, %c0_i32_0 : i32, i32, i32
  }
  func.func @transform_1(%arg0: i32) -> (i32, i32, i32) {
    %c0_i32 = arith.constant 0 : i32
    %c0_i32_0 = arith.constant 0 : i32
    %c0_i32_1 = arith.constant 0 : i32
    return %arg0, %c0_i32, %c0_i32_0 : i32, i32, i32
  }
  func.func @transform_2(%arg0: i32) -> (i32, i32) {
    %c0_i32 = arith.constant 0 : i32
    %c0_i32_0 = arith.constant 0 : i32
    %c0_i32_1 = arith.constant 0 : i32
    return %c0_i32, %c0_i32_0 : i32, i32
  }
  func.func @transform_3(%arg0: i32) -> (i32, i32) {
    %c0_i32 = arith.constant 0 : i32
    %c0_i32_0 = arith.constant 0 : i32
    %c0_i32_1 = arith.constant 0 : i32
    return %c0_i32, %c0_i32_0 : i32, i32
  }
  func.func @transform_4(%arg0: i32) -> (i32, i32) {
    %c0_i32 = arith.constant 0 : i32
    %c0_i32_0 = arith.constant 0 : i32
    %c0_i32_1 = arith.constant 0 : i32
    return %c0_i32, %c0_i32_0 : i32, i32
  }
  func.func @transform_5(%arg0: i32) -> (i32, i32) {
    %c0_i32 = arith.constant 0 : i32
    %c0_i32_0 = arith.constant 0 : i32
    %c0_i32_1 = arith.constant 0 : i32
    return %c0_i32, %c0_i32_0 : i32, i32
  }
  func.func @transform_6(%arg0: i32) -> (i32, i32) {
    %c0_i32 = arith.constant 0 : i32
    %c0_i32_0 = arith.constant 0 : i32
    %c0_i32_1 = arith.constant 0 : i32
    return %c0_i32, %c0_i32_0 : i32, i32
  }
  func.func @transform_7(%arg0: i32) -> (i32, i32) {
    %c0_i32 = arith.constant 0 : i32
    %c0_i32_0 = arith.constant 0 : i32
    %c0_i32_1 = arith.constant 0 : i32
    return %c0_i32, %c0_i32_0 : i32, i32
  }
  func.func @transform_8(%arg0: i32) -> (i32, i32) {
    %c0_i32 = arith.constant 0 : i32
    %c0_i32_0 = arith.constant 0 : i32
    %c0_i32_1 = arith.constant 0 : i32
    return %c0_i32, %c0_i32_0 : i32, i32
  }
  func.func @transform_9(%arg0: i32) -> (i32, i32, i32) {
    %c0_i32 = arith.constant 0 : i32
    %c0_i32_0 = arith.constant 0 : i32
    %c0_i32_1 = arith.constant 0 : i32
    return %arg0, %c0_i32, %c0_i32_0 : i32, i32, i32
  }
  func.func @transform_10(%arg0: i32) -> (i32, i32, i32) {
    %c0_i32 = arith.constant 0 : i32
    %c0_i32_0 = arith.constant 0 : i32
    %c0_i32_1 = arith.constant 0 : i32
    return %arg0, %c0_i32, %c0_i32_0 : i32, i32, i32
  }
}

module attributes {stable_mosaic.version = 11 : i64} {
  func.func @_assemble_kernel(%arg0: i32, %arg1: memref<64x8xf32, #tpu.memory_space<vmem>>, %arg2: memref<1x64x1xf32, #tpu.memory_space<vmem>>, %arg3: memref<1x8x32xf32, #tpu.memory_space<vmem>>, %arg4: memref<1x8x256xf32, #tpu.memory_space<vmem>>) attributes {dimension_semantics = [#tpu.dimension_semantics<parallel>], iteration_bounds = array<i64: 2>, scalar_prefetch = 0 : i64, scratch_operands = 0 : i64, tpu.core_type = #tpu.core_type<tc>, window_params = [{pipeline_mode = #tpu.pipeline_mode<synchronous>, transform_indices = @transform_0, window_bounds = array<i64: 64, 8>}, {transform_indices = @transform_1, window_bounds = array<i64: 1, 64, 1>}, {transform_indices = @transform_2, window_bounds = array<i64: 1, 8, 32>}, {transform_indices = @transform_3, window_bounds = array<i64: 1, 8, 256>}]} {
    %c0 = arith.constant 0 : index
    %c0_0 = arith.constant 0 : index
    %0 = vector.load %arg1[%c0, %c0_0] : memref<64x8xf32, #tpu.memory_space<vmem>>, vector<64x8xf32>
    %c0_1 = arith.constant 0 : index
    %c0_2 = arith.constant 0 : index
    %c0_3 = arith.constant 0 : index
    %1 = vector.load %arg3[%c0_1, %c0_2, %c0_3] : memref<1x8x32xf32, #tpu.memory_space<vmem>>, vector<1x8x32xf32>
    %2 = vector.shape_cast %1 : vector<1x8x32xf32> to vector<8x32xf32>
    %cst = arith.constant dense<0.000000e+00> : vector<64x32xf32>
    %3 = tpu.matmul %0, %2, %cst {dimension_numbers = #tpu.dot_dimension_numbers<[1], [0], [0], [1], [0, 0, 1, 1], [], []>} : vector<64x8xf32>, vector<8x32xf32>, vector<64x32xf32> -> vector<64x32xf32>
    %c0_4 = arith.constant 0 : index
    %c0_5 = arith.constant 0 : index
    %c0_6 = arith.constant 0 : index
    %4 = vector.load %arg2[%c0_4, %c0_5, %c0_6] : memref<1x64x1xf32, #tpu.memory_space<vmem>>, vector<1x64x1xf32>
    %5 = vector.shape_cast %4 : vector<1x64x1xf32> to vector<64x1xf32>
    %6 = vector.broadcast %5 : vector<64x1xf32> to vector<64x32xf32>
    %7 = arith.mulf %3, %6 : vector<64x32xf32>
    %8 = vector.extract_strided_slice %7 {offsets = [0, 0], sizes = [8, 32], strides = [1, 1]} : vector<64x32xf32> to vector<8x32xf32>
    %c0_7 = arith.constant 0 : index
    %c0_8 = arith.constant 0 : index
    %c0_9 = arith.constant 0 : index
    %9 = vector.load %arg4[%c0_7, %c0_8, %c0_9] : memref<1x8x256xf32, #tpu.memory_space<vmem>>, vector<1x8x32xf32>
    %10 = vector.shape_cast %9 : vector<1x8x32xf32> to vector<8x32xf32>
    %11 = vector.shape_cast %8 : vector<8x32xf32> to vector<1x8x32xf32>
    tpu.vector_store %arg4[%c0_7, %c0_8, %c0_9], %11 {strides = array<i32>} : memref<1x8x256xf32, #tpu.memory_space<vmem>>, vector<1x8x32xf32>,
    %12 = vector.extract_strided_slice %7 {offsets = [8, 0], sizes = [8, 32], strides = [1, 1]} : vector<64x32xf32> to vector<8x32xf32>
    %c0_10 = arith.constant 0 : index
    %c0_11 = arith.constant 0 : index
    %c32 = arith.constant 32 : index
    %13 = vector.load %arg4[%c0_10, %c0_11, %c32] : memref<1x8x256xf32, #tpu.memory_space<vmem>>, vector<1x8x32xf32>
    %14 = vector.shape_cast %13 : vector<1x8x32xf32> to vector<8x32xf32>
    %15 = vector.shape_cast %12 : vector<8x32xf32> to vector<1x8x32xf32>
    tpu.vector_store %arg4[%c0_10, %c0_11, %c32], %15 {strides = array<i32>} : memref<1x8x256xf32, #tpu.memory_space<vmem>>, vector<1x8x32xf32>,
    %16 = vector.extract_strided_slice %7 {offsets = [16, 0], sizes = [8, 32], strides = [1, 1]} : vector<64x32xf32> to vector<8x32xf32>
    %c0_12 = arith.constant 0 : index
    %c0_13 = arith.constant 0 : index
    %c64 = arith.constant 64 : index
    %17 = vector.load %arg4[%c0_12, %c0_13, %c64] : memref<1x8x256xf32, #tpu.memory_space<vmem>>, vector<1x8x32xf32>
    %18 = vector.shape_cast %17 : vector<1x8x32xf32> to vector<8x32xf32>
    %19 = vector.shape_cast %16 : vector<8x32xf32> to vector<1x8x32xf32>
    tpu.vector_store %arg4[%c0_12, %c0_13, %c64], %19 {strides = array<i32>} : memref<1x8x256xf32, #tpu.memory_space<vmem>>, vector<1x8x32xf32>,
    %20 = vector.extract_strided_slice %7 {offsets = [24, 0], sizes = [8, 32], strides = [1, 1]} : vector<64x32xf32> to vector<8x32xf32>
    %c0_14 = arith.constant 0 : index
    %c0_15 = arith.constant 0 : index
    %c96 = arith.constant 96 : index
    %21 = vector.load %arg4[%c0_14, %c0_15, %c96] : memref<1x8x256xf32, #tpu.memory_space<vmem>>, vector<1x8x32xf32>
    %22 = vector.shape_cast %21 : vector<1x8x32xf32> to vector<8x32xf32>
    %23 = vector.shape_cast %20 : vector<8x32xf32> to vector<1x8x32xf32>
    tpu.vector_store %arg4[%c0_14, %c0_15, %c96], %23 {strides = array<i32>} : memref<1x8x256xf32, #tpu.memory_space<vmem>>, vector<1x8x32xf32>,
    %24 = vector.extract_strided_slice %7 {offsets = [32, 0], sizes = [8, 32], strides = [1, 1]} : vector<64x32xf32> to vector<8x32xf32>
    %c0_16 = arith.constant 0 : index
    %c0_17 = arith.constant 0 : index
    %c128 = arith.constant 128 : index
    %25 = vector.load %arg4[%c0_16, %c0_17, %c128] : memref<1x8x256xf32, #tpu.memory_space<vmem>>, vector<1x8x32xf32>
    %26 = vector.shape_cast %25 : vector<1x8x32xf32> to vector<8x32xf32>
    %27 = vector.shape_cast %24 : vector<8x32xf32> to vector<1x8x32xf32>
    tpu.vector_store %arg4[%c0_16, %c0_17, %c128], %27 {strides = array<i32>} : memref<1x8x256xf32, #tpu.memory_space<vmem>>, vector<1x8x32xf32>,
    %28 = vector.extract_strided_slice %7 {offsets = [40, 0], sizes = [8, 32], strides = [1, 1]} : vector<64x32xf32> to vector<8x32xf32>
    %c0_18 = arith.constant 0 : index
    %c0_19 = arith.constant 0 : index
    %c160 = arith.constant 160 : index
    %29 = vector.load %arg4[%c0_18, %c0_19, %c160] : memref<1x8x256xf32, #tpu.memory_space<vmem>>, vector<1x8x32xf32>
    %30 = vector.shape_cast %29 : vector<1x8x32xf32> to vector<8x32xf32>
    %31 = vector.shape_cast %28 : vector<8x32xf32> to vector<1x8x32xf32>
    tpu.vector_store %arg4[%c0_18, %c0_19, %c160], %31 {strides = array<i32>} : memref<1x8x256xf32, #tpu.memory_space<vmem>>, vector<1x8x32xf32>,
    %32 = vector.extract_strided_slice %7 {offsets = [48, 0], sizes = [8, 32], strides = [1, 1]} : vector<64x32xf32> to vector<8x32xf32>
    %c0_20 = arith.constant 0 : index
    %c0_21 = arith.constant 0 : index
    %c192 = arith.constant 192 : index
    %33 = vector.load %arg4[%c0_20, %c0_21, %c192] : memref<1x8x256xf32, #tpu.memory_space<vmem>>, vector<1x8x32xf32>
    %34 = vector.shape_cast %33 : vector<1x8x32xf32> to vector<8x32xf32>
    %35 = vector.shape_cast %32 : vector<8x32xf32> to vector<1x8x32xf32>
    tpu.vector_store %arg4[%c0_20, %c0_21, %c192], %35 {strides = array<i32>} : memref<1x8x256xf32, #tpu.memory_space<vmem>>, vector<1x8x32xf32>,
    %36 = vector.extract_strided_slice %7 {offsets = [56, 0], sizes = [8, 32], strides = [1, 1]} : vector<64x32xf32> to vector<8x32xf32>
    %c0_22 = arith.constant 0 : index
    %c0_23 = arith.constant 0 : index
    %c224 = arith.constant 224 : index
    %37 = vector.load %arg4[%c0_22, %c0_23, %c224] : memref<1x8x256xf32, #tpu.memory_space<vmem>>, vector<1x8x32xf32>
    %38 = vector.shape_cast %37 : vector<1x8x32xf32> to vector<8x32xf32>
    %39 = vector.shape_cast %36 : vector<8x32xf32> to vector<1x8x32xf32>
    tpu.vector_store %arg4[%c0_22, %c0_23, %c224], %39 {strides = array<i32>} : memref<1x8x256xf32, #tpu.memory_space<vmem>>, vector<1x8x32xf32>,
    return
  }
  func.func @transform_0(%arg0: i32) -> (i32, i32) {
    %c0_i32 = arith.constant 0 : i32
    %c0_i32_0 = arith.constant 0 : i32
    %c0_i32_1 = arith.constant 0 : i32
    return %c0_i32, %c0_i32_0 : i32, i32
  }
  func.func @transform_1(%arg0: i32) -> (i32, i32, i32) {
    %c0_i32 = arith.constant 0 : i32
    %c0_i32_0 = arith.constant 0 : i32
    %c0_i32_1 = arith.constant 0 : i32
    return %arg0, %c0_i32, %c0_i32_0 : i32, i32, i32
  }
  func.func @transform_2(%arg0: i32) -> (i32, i32, i32) {
    %c0_i32 = arith.constant 0 : i32
    %c0_i32_0 = arith.constant 0 : i32
    %c0_i32_1 = arith.constant 0 : i32
    return %arg0, %c0_i32, %c0_i32_0 : i32, i32, i32
  }
  func.func @transform_3(%arg0: i32) -> (i32, i32, i32) {
    %c0_i32 = arith.constant 0 : i32
    %c0_i32_0 = arith.constant 0 : i32
    %c0_i32_1 = arith.constant 0 : i32
    return %arg0, %c0_i32, %c0_i32_0 : i32, i32, i32
  }
}

</mosaic_0001>

<bundles_post_ra>
// kernel: tdcm_forward.3
= control target key start
LH: loop header
LB: loop body
LE: loop exit
PB: predicated region body
PF: predicated region fallthrough
CT: control target
= control target key end

     0   :  { %s494_s12 = smov 0   ;;  %s571_s0 = inlined_call_operand.vmem [shape: f32[64,8], index: 0, kind: input, shape index: {}]   ;;  %s572_s1 = inlined_call_operand.vmem [shape: f32[2,64,1], index: 1, kind: input, shape index: {}]   ;;  %s573_s2 = inlined_call_operand.vmem [shape: f32[2,8,32], index: 2, kind: input, shape index: {}]   ;;  %s574_s3 = inlined_call_operand.vmem [shape: f32[2,8,256], index: 3, kind: output, shape index: {}]  }
   0x1 LB: > { %s422_s13 = sadd.s32 4294967295, %s468_s12   ;;  %p426_p0 = scmp.ge.s32.totalorder %s468_s12, 1  ;;  %s468_s12 = sphi %s494_s12, %s13_s12  }
   0x2   : > { %p146_p1 = scmp.lt.s32.totalorder %s468_s12, 3 }
   0x4   : > { %p147_p2 = pnand %p426_p0, %p146_p1 }
   0x5   : > { %p174_p3 = scmp.lt.s32.totalorder (!%p147_p2), %s422_s13, 1 }
   0x6   : > { %150 = sbr.rel (%p147_p2) target bundleno = 283 (0x11b), region = 32 }
   0xb   : > { %v470_v0 = vmov 0   ;;  %s576_s13 = smov (!%p174_p3, %s422_s13), 1  ;;  %v188_v1 = vld [vmem:[%s571_s0] sm:$0xff]  ;;  %vm197_vm0 = vcmask 64512   ;;  %v194_v4 = vld [vmem:[%s571_s0 + $0x30] sm:$0xff]  ;;  %v189_v9 = vld [vmem:[%s571_s0 + $0x8] sm:$0xff] }
   0xc   : > { %460 = vset.pattern.permute.xlu1 %v470_v0  ;;  %459 = vset.pattern.permute.xlu0 %v470_v0  ;;  %s442_s14 = sshll.u32 %s576_s13, 6  ;;  %s429_s15 = sshll.u32 %s576_s13, 3  ;;  %v192_v3 = vld [vmem:[%s571_s0 + $0x20] sm:$0xff]  ;;  %v190_v8 = vld [vmem:[%s571_s0 + $0x10] sm:$0xff]  ;;  %v193_v10 = vld [vmem:[%s571_s0 + $0x28] sm:$0xff]  ;;  %vm319_vm1 = vcmask 261120  }
   0xd   : > { %461 = vset.pattern.permute.xlu2 %v470_v0  ;;  %s509_s18 = scalar_lea.vmem %s572_s1, %s442_s14  ;;  %s182_s21 = scalar_lea.vmem %s573_s2, %s429_s15  ;;  %v195_v11 = vld [vmem:[%s571_s0 + $0x38] sm:$0xff]  ;;  %vm325_vm2 = vcmask 523520   ;;  %vm331_vm3 = vcmask 785920   ;;  %vm337_vm4 = vcmask 1048320  }
   0xe   : > { %v196_v2 = vld [vmem:[%s182_s21] sm:$0xff]  ;;  %v265_v5 = vld [vmem:[%s509_s18 + $0x10] sm:$0xff]  ;;  %v264_v6 = vld [vmem:[%s509_s18 + $0x8] sm:$0xff]  ;;  %s443_s11 = sshll.u32 %s576_s13, 4  ;;  %s471_s14 = smov 64  }
   0xf   : > { %237 = vmatpush.msra.mxu0 %v196_v2  ;;  %445 = vmatpush.msra.mxu2 %v196_v2  ;;  %v266_v7 = vld [vmem:[%s509_s18 + $0x18] sm:$0xff]  ;;  %v269_v12 = vld [vmem:[%s509_s18 + $0x30] sm:$0xff]  ;;  %v268_v13 = vld [vmem:[%s509_s18 + $0x28] sm:$0xff]  ;;  %s558_s17 = scalar_lea.vmem %s574_s3, %s443_s11  ;;  %s472_s13 = smov 32  }
  0x10   : > { %446 = vmatpush.msra.mxu3 %v196_v2  ;;  %432 = vmatmul.msk.f32.vlgmr.msra.gmra.mxu0 %vm197_vm0, %v188_v1  ;;  %v270_v14 = vld [vmem:[%s509_s18 + $0x38] sm:$0xff]  ;;  %v267_v16 = vld [vmem:[%s509_s18 + $0x20] sm:$0xff] }
  0x11   : > { %436 = vmatmul.msk.f32.vlgmr.msra.gmra.mxu2 %vm197_vm0, %v192_v3  ;;  %438 = vmatmul.msk.f32.vlgmr.msra.gmra.mxu3 %vm197_vm0, %v194_v4  ;;  %v191_v15 = vld [vmem:[%s571_s0 + $0x18] sm:$0xff]  ;;  %v263_v17 = vld [vmem:[%s509_s18] sm:$0xff]  ;;  %s473_s18 = smov 96  }
  0x12   : > { %283 = vperm.xlu1 %460, %v265_v5   ;;  %278 = vperm.xlu0 %459, %v264_v6  }
  0x13   : > { %444 = vmatpush.msra.mxu1 %v196_v2  ;;  %288 = vperm.xlu2 %461, %v266_v7  }
  0x14   : > { %434 = vmatmul.msk.f32.vlgmr.msra.gmra.mxu1 %vm197_vm0, %v190_v8 }
  0x18   : > { %433 = vmatmul.msk.f32.gmra.mxu0 %vm197_vm0, %v189_v9 }
  0x19   : > { %437 = vmatmul.msk.f32.gmra.mxu2 %vm197_vm0, %v193_v10  ;;  %439 = vmatmul.msk.f32.gmra.mxu3 %vm197_vm0, %v195_v11 }
  0x1a   : > { %303 = vperm.xlu1 %460, %v269_v12   ;;  %298 = vperm.xlu0 %459, %v268_v13  }
  0x1b   : > { %308 = vperm.xlu2 %461, %v270_v14  }
  0x1c   : > { %435 = vmatmul.msk.f32.gmra.mxu1 %vm197_vm0, %v191_v15 }
  0x22   : > { %293 = vperm.xlu1 %460, %v267_v16   ;;  %273 = vperm.xlu0 %459, %v263_v17  }
  0x6d   : > { %v289_v23 = vpop.permute.xlu2 %288 }
  0x75   : > { %v309_v34 = vpop.permute.xlu2 %308 }
  0x84   : > { %v284_v18 = vpop.permute.xlu1 %283  ;;  %v279_v19 = vpop.permute.xlu0 %278 }
  0x8c   : > { %v304_v20 = vpop.permute.xlu1 %303  ;;  %v299_v21 = vpop.permute.xlu0 %298 }
  0x8d   : > { %v239_v22 = vpop.f32.mrf.mxu0 }
  0x91   : > { %v245_v24 = vpop.f32.mrf.mxu1 }
  0x92   : > { %v313_v25 = vmul.f32 %v284_v18, %v245_v24 }
  0x94   : > { %v251_v26 = vpop.f32.mrf.mxu2  ;;  %v257_v27 = vpop.f32.mrf.mxu3  ;;  %328 = vrot.lane.b32.xlu1 %v313_v25, %s471_s14 }
  0x95   : > { %v294_v28 = vpop.permute.xlu1 %293  ;;  %v274_v29 = vpop.permute.xlu0 %273  ;;  %v317_v39 = vmul.f32 %v304_v20, %v257_v27 }
  0x96   : > { %v315_v30 = vmul.f32 %v294_v28, %v251_v26  ;;  %v311_v31 = vmul.f32 %v274_v29, %v239_v22  ;;  %v242_v32 = vpop.f32.mrf.mxu0 }
  0x97   : > { %v312_v33 = vmul.f32 %v279_v19, %v242_v32 }
  0x98   : > { %339 = vst.msk [vmem:[%s558_s17 + $0x8] sm:$0xff] %vm319_vm1, %v315_v30 }
  0x99   : > { %320 = vst.msk [vmem:[%s558_s17] sm:$0xff] %vm319_vm1, %v311_v31  ;;  %322 = vrot.lane.b32.xlu2 %v312_v33, %s472_s13  ;;  %v248_v40 = vpop.f32.mrf.mxu1 }
  0x9a   : > { %v314_v41 = vmul.f32 %v289_v23, %v248_v40 }
  0x9c   : > { %v254_v35 = vpop.f32.mrf.mxu2  ;;  %v260_v36 = vpop.f32.mrf.mxu3 }
  0x9d   : > { %v316_v37 = vmul.f32 %v299_v21, %v254_v35  ;;  %v318_v38 = vmul.f32 %v309_v34, %v260_v36 }
  0x9f   : > { %351 = vrot.lane.b32.xlu1 %v318_v38, %s473_s18  ;;  %341 = vrot.lane.b32.xlu0 %v316_v37, %s472_s13 }
  0xa1   : > { %346 = vrot.lane.b32.xlu2 %v317_v39, %s471_s14 }
  0xa7   : > { %334 = vrot.lane.b32.xlu0 %v314_v41, %s473_s18 }
  0xf3   : > { %v323_v42 = vpop.permute.xlu2 %322 }
  0xf4   : > { %326 = vst.msk [vmem:[%s558_s17] sm:$0xff] %vm325_vm2, %v323_v42 }
  0xfb   : > { %v347_v45 = vpop.permute.xlu2 %346 }
 0x106   : > { %v329_v43 = vpop.permute.xlu1 %328 }
 0x107   : > { %332 = vst.msk [vmem:[%s558_s17] sm:$0xff] %vm331_vm3, %v329_v43 }
 0x111   : > { %v342_v44 = vpop.permute.xlu0 %341  ;;  %v352_v46 = vpop.permute.xlu1 %351 }
 0x112   : > { %344 = vst.msk [vmem:[%s558_s17 + $0x8] sm:$0xff] %vm325_vm2, %v342_v44 }
 0x113   : > { %349 = vst.msk [vmem:[%s558_s17 + $0x8] sm:$0xff] %vm331_vm3, %v347_v45 }
 0x114   : > { %354 = vst.msk [vmem:[%s558_s17 + $0x8] sm:$0xff] %vm337_vm4, %v352_v46 }
 0x119   : > { %v335_v47 = vpop.permute.xlu0 %334 }
 0x11a   : > { %338 = vst.msk [vmem:[%s558_s17] sm:$0xff] %vm337_vm4, %v335_v47 }
 0x11b PF: > { %s13_s12 = sadd.s32 1, %s468_s12  }
 0x11c   : > { %p10_p4 = scmp.ge.s32.totalorder %s13_s12, 4  }
 0x11e   :  { %12 = sbr.rel (!%p10_p4) target bundleno = 1 (0x1), region = 65 }

// kernel: tdcm_forward.2
= control target key start
LH: loop header
LB: loop body
LE: loop exit
PB: predicated region body
PF: predicated region fallthrough
CT: control target
= control target key end

     0   :  { %s721_s13 = smov 0   ;;  %s814_s0 = inlined_call_operand.vmem [shape: f32[2,8,32], index: 0, kind: input, shape index: {}]   ;;  %s815_s1 = inlined_call_operand.vmem [shape: f32[2,8,32], index: 1, kind: input, shape index: {}]   ;;  %s816_s2 = inlined_call_operand.vmem [shape: f32[32,64], index: 2, kind: input, shape index: {}]   ;;  %s817_s3 = inlined_call_operand.vmem [shape: f32[32,64], index: 3, kind: input, shape index: {}]   ;;  %s818_s4 = inlined_call_operand.vmem [shape: f32[1,64], index: 4, kind: input, shape index: {}]   ;;  %s819_s5 = inlined_call_operand.vmem [shape: f32[1,64], index: 5, kind: input, shape index: {}]   ;;  %s820_s6 = inlined_call_operand.vmem [shape: f32[8,64], index: 6, kind: input, shape index: {}]   ;;  %s821_s7 = inlined_call_operand.vmem [shape: f32[8,64], index: 7, kind: input, shape index: {}]   ;;  %s822_s8 = inlined_call_operand.vmem [shape: f32[64,8], index: 8, kind: input, shape index: {}]   ;;  %s823_s9 = inlined_call_operand.vmem [shape: f32[2,8,32], index: 9, kind: output, shape index: {0}]   ;;  %s824_s10 = inlined_call_operand.vmem [shape: f32[2,1,8], index: 10, kind: output, shape index: {1}]  }
   0x1 LB: > { %s632_s14 = sadd.s32 4294967295, %s664_s13   ;;  %p636_p0 = scmp.ge.s32.totalorder %s664_s13, 1  ;;  %s664_s13 = sphi %s721_s13, %s21_s13  }
   0x2   : > { %p323_p1 = scmp.lt.s32.totalorder %s664_s13, 3 }
   0x4   : > { %p324_p2 = pnand %p636_p0, %p323_p1 }
   0x5   : > { %p366_p3 = scmp.lt.s32.totalorder (!%p324_p2), %s632_s14, 1 }
   0x6   : > { %327 = sbr.rel (%p324_p2) target bundleno = 564 (0x234), region = 56 }
   0xb   : > { %v418_v0 = vld [vmem:[%s817_s3 + $0x18] sm:$0xff]  ;;  %v417_v1 = vld [vmem:[%s817_s3 + $0x10] sm:$0xff]  ;;  %v416_v4 = vld [vmem:[%s817_s3 + $0x8] sm:$0xff]  ;;  %s826_s14 = smov (!%p366_p3, %s632_s14), 1  ;;  %vm391_vm0 = vcmask 261120   ;;  %vm447_vm1 = vcmask 523264  }
   0xc   : > { %v386_v2 = vld [vmem:[%s816_s2 + $0x18] sm:$0xff]  ;;  %438 = vmatpush.msra.mxu1 %v418_v0  ;;  %v385_v3 = vld [vmem:[%s816_s2 + $0x10] sm:$0xff]  ;;  %v384_v5 = vld [vmem:[%s816_s2 + $0x8] sm:$0xff]  ;;  %s637_s29 = sshll.u32 %s826_s14, 3  ;;  %vm475_vm2 = vcmask 64512   ;;  %vm540_vm3 = vcmask 57344  }
   0xd   : > { %407 = vmatpush.msra.mxu0 %v386_v2  ;;  %v415_v6 = vld [vmem:[%s817_s3] sm:$0xff]  ;;  %s373_s16 = scalar_lea.vmem %s815_s1, %s637_s29  ;;  %s369_s19 = scalar_lea.vmem %s814_s0, %s637_s29  ;;  %v508_v17 = vld [vmem:[%s822_s8 + $0x38] sm:$0xff]  ;;  %v507_v18 = vld [vmem:[%s822_s8 + $0x30] sm:$0xff] }
   0xe   : > { %439 = vmatpush.msra.mxu1 %v417_v1  ;;  %v383_v7 = vld [vmem:[%s816_s2] sm:$0xff]  ;;  %s377_s26 = scalar_lea.vmem %s823_s9, %s637_s29  ;;  %520 = vmatpush.msra.mxu3 %v508_v17  ;;  %v506_v19 = vld [vmem:[%s822_s8 + $0x28] sm:$0xff]  ;;  %v504_v21 = vld [vmem:[%s822_s8 + $0x18] sm:$0xff]  ;;  %s380_s29 = scalar_lea.vmem %s824_s10, %s826_s14 }
   0xf   : > { %408 = vmatpush.msra.mxu0 %v385_v3  ;;  %v382_v8 = vld [vmem:[%s373_s16] sm:$0xff]  ;;  %v503_v22 = vld [vmem:[%s822_s8 + $0x10] sm:$0xff]  ;;  %v502_v24 = vld [vmem:[%s822_s8 + $0x8] sm:$0xff] }
  0x10   : > { %440 = vmatpush.msra.mxu1 %v416_v4  ;;  %v381_v9 = vld [vmem:[%s369_s19] sm:$0xff]  ;;  %521 = vmatpush.msra.mxu3 %v507_v18 }
  0x11   : > { %409 = vmatpush.msra.mxu0 %v384_v5  ;;  %v656_v10 = vld [vmem:[%s819_s5] ss:$0 sm:$0xff] }
  0x12   : > { %441 = vmatpush.msra.mxu1 %v415_v6  ;;  %v657_v11 = vld [vmem:[%s818_s4] ss:$0 sm:$0xff]  ;;  %522 = vmatpush.msra.mxu3 %v506_v19 }
  0x13   : > { %410 = vmatpush.msra.mxu0 %v383_v7  ;;  %641 = vmatmul.msk.f32.vlgmr.msra.gmra.mxu1 %vm391_vm0, %v382_v8  ;;  %v474_v15 = vld [vmem:[%s820_s6] sm:$0xff] }
  0x14   : > { %640 = vmatmul.msk.f32.vlgmr.msra.gmra.mxu0 %vm391_vm0, %v381_v9  ;;  %v505_v20 = vld [vmem:[%s822_s8 + $0x20] sm:$0xff] }
  0x15   : > { %523 = vmatpush.msra.mxu3 %v505_v20  ;;  %v501_v25 = vld [vmem:[%s822_s8] sm:$0xff] }
  0x16   : > { %v499_v26 = vld [vmem:[%s821_s7] sm:$0xff] }
  0x17   : > { %524 = vmatpush.msra.mxu3 %v504_v21 }
  0x19   : > { %525 = vmatpush.msra.mxu3 %v503_v22 }
  0x1b   : > { %526 = vmatpush.msra.mxu3 %v502_v24 }
  0x1d   : > { %527 = vmatpush.msra.mxu3 %v501_v25 }
  0x90   : > { %v443_v12 = vpop.f32.mrf.mxu1 }
  0x91   : > { %v412_v13 = vpop.f32.mrf.mxu0  ;;  %v444_v14 = vadd.f32 %v656_v10, %v443_v12 }
  0x92   : > { %v413_v16 = vadd.f32 %v657_v11, %v412_v13 }
  0x93   : > { %446 = vst.msk [vmem:[%s377_s26] sm:$0xff] %vm391_vm0, %v444_v14  ;;  %642 = vmatpush.xpose.msk.msra.mxu2 %vm447_vm1, %v444_v14 }
  0x96   : > { %643 = vmatmul.msk.f32.vlgmr.msra.gmra.mxu2 %vm447_vm1, %v413_v16 }
  0x97   : > { %494 = vmatpush.msrb.mxu2 %v474_v15 }
 0x119   : > { %v471_v23 = vpop.f32.mrf.mxu2 }
 0x11a   : > { %644 = vmatmul.msk.f32.vlgmr.msrb.gmra.mxu2 %vm475_vm2, %v471_v23 }
 0x19d   : > { %v496_v27 = vpop.f32.mrf.mxu2 }
 0x19e   : > { %v500_v28 = vmul.f32 %v499_v26, %v496_v27 }
 0x1a0   : > { %645 = vmatmul.msk.f32.vlgmr.msra.gmra.mxu3 %vm447_vm1, %v500_v28 }
 0x223   : > { %v529_v29 = vpop.f32.mrf.mxu3 }
 0x224   : > { %v532_v30 = vsel %vm475_vm2, %v529_v29, 0.0 }
 0x225   : > { %v533_v31 = vrot.slane %v532_v30, 4 }
 0x227   : > { %v534_v32 = vadd.f32 %v533_v31, %v532_v30 }
 0x229   : > { %v535_v33 = vrot.slane %v534_v32, 2 }
 0x22b   : > { %v536_v34 = vadd.f32 %v535_v33, %v534_v32 }
 0x22d   : > { %v537_v35 = vrot.slane %v536_v34, 1 }
 0x22f   : > { %v538_v36 = vadd.f32 %v537_v35, %v536_v34 }
 0x231   : > { %v539_v37 = vmul.f32 0.03125, %v538_v36 }
 0x233   : > { %541 = vst.msk [vmem:[%s380_s29] sm:$0x1] %vm540_vm3, %v539_v37 }
 0x234 PF: > { %s21_s13 = sadd.s32 1, %s664_s13  }
 0x235   : > { %p18_p4 = scmp.ge.s32.totalorder %s21_s13, 4  }
 0x237   :  { %20 = sbr.rel (!%p18_p4) target bundleno = 1 (0x1), region = 101 }

</bundles_post_ra>
